<compile_context>
chip_gen: v5e
topology: v5e:2x2
jax: 0.10.0
libtpu: 0.0.40
codegen_flags: <defaults>
</compile_context>

<pallas_src>
import functools

import jax
import jax.numpy as jnp
from jax import lax
from jax.experimental import pallas as pl
from jax.experimental.pallas import tpu as pltpu


def normalize_adjacency_matrix(adj):
    """D^-1 * A row normalization (inf -> 0 for empty rows), dense float32."""
    rowsum = jnp.sum(adj, axis=1)
    inv_rowsum = jnp.where(rowsum > 0, 1.0 / rowsum, 0.0)
    return adj * inv_rowsum[:, None]


_OUT_LANES = 128


# ---------------------------------------------------------------------------
# Fused Pallas kernel: propagation loop + one-hot gather + score in one call
# ---------------------------------------------------------------------------
def _lightgcn_fused_kernel(uidx_ref, iidx_ref, a_ref, invdeg_ref, ie_ref,
                           o_ref, *, n_layers):
    # Binary adjacency stays resident in VMEM (bf16, 0/1 exact) for the whole
    # kernel; the D^-1 normalization is an f32 per-row scale (never rounded).
    a = a_ref[...]                                   # (U, I) bf16 binary
    inv_deg = invdeg_ref[...]                        # (U, 1) f32
    iemb = ie_ref[...].astype(jnp.float32)           # (I, E) layer-0 items

    n_user = a.shape[0]
    n_item = a.shape[1]
    batch = o_ref.shape[0]

    # Propagation loop fully in-kernel (static unroll; n_layers is small).
    uemb = None
    for _ in range(n_layers):
        # user update:  (D^-1 A) @ i  ==  inv_deg * (A_bin @ i)
        uemb = inv_deg * jnp.dot(a, iemb.astype(jnp.bfloat16),
                                 preferred_element_type=jnp.float32)
        # item update:  (D^-1 A)^T @ u == A_bin^T @ (inv_deg * u)
        # Contract over A's user axis on the SAME VMEM copy of A (no A^T).
        iemb = lax.dot_general(a, (inv_deg * uemb).astype(jnp.bfloat16),
                               dimension_numbers=(((0,), (0,)), ((), ())),
                               preferred_element_type=jnp.float32)

    # Batch gather via one-hot matmuls on the MXU (exact row selection,
    # replaces serial scalar-addressed row copies + full-size f32 scratch).
    uidx = uidx_ref[...]                             # (B, 1) int32
    iidx = iidx_ref[...]                             # (B, 1) int32
    onehot_u = (lax.broadcasted_iota(jnp.int32, (batch, n_user), 1)
                == uidx).astype(jnp.float32)         # (B, U)
    onehot_i = (lax.broadcasted_iota(jnp.int32, (batch, n_item), 1)
                == iidx).astype(jnp.float32)         # (B, I)
    uf = jnp.dot(onehot_u, uemb, preferred_element_type=jnp.float32)   # (B, E)
    if_ = jnp.dot(onehot_i, iemb, preferred_element_type=jnp.float32)  # (B, E)

    # Score: dot over E (f32), sigmoid (EUP), lane-dense unmasked store.
    s = jnp.sum(uf * if_, axis=1, keepdims=True)                       # (B, 1)
    o_ref[...] = jnp.broadcast_to(jax.nn.sigmoid(s), o_ref.shape)      # (B, 128)


@functools.partial(jax.jit, static_argnames=("n_layers",))
def lightgcn_forward(user_indices, item_indices, a_bin_bf16, inv_deg,
                     item_emb_bf16, *, n_layers):
    U, I = a_bin_bf16.shape
    E = item_emb_bf16.shape[1]
    B = user_indices.shape[0]

    kernel = functools.partial(_lightgcn_fused_kernel, n_layers=n_layers)

    out = pl.pallas_call(
        kernel,
        out_shape=jax.ShapeDtypeStruct((B, _OUT_LANES), jnp.float32),
        in_specs=[
            pl.BlockSpec((B, 1), lambda: (0, 0)),   # user indices (VMEM int32)
            pl.BlockSpec((B, 1), lambda: (0, 0)),   # item indices (VMEM int32)
            pl.BlockSpec((U, I), lambda: (0, 0)),   # binary A (bf16)
            pl.BlockSpec((U, 1), lambda: (0, 0)),   # inv-degree (f32)
            pl.BlockSpec((I, E), lambda: (0, 0)),   # item emb (bf16)
        ],
        out_specs=pl.BlockSpec((B, _OUT_LANES), lambda: (0, 0)),
        compiler_params=pltpu.CompilerParams(vmem_limit_bytes=32 * 1024 * 1024),
    )(user_indices.reshape(B, 1), item_indices.reshape(B, 1),
      a_bin_bf16, inv_deg, item_emb_bf16)

    # Only lane 0 carries the score (broadcast was for an unmasked store).
    return out[:, 0]


# ---------------------------------------------------------------------------
# Model glue (parameters / adjacency preprocessing), mirrors the nn.Module
# ---------------------------------------------------------------------------
class LightGCNPallas:
    def __init__(self, num_users, num_items, embedding_size, n_layers,
                 adjacency_matrix, key):
        self.embedding_size = embedding_size
        self.n_layers = n_layers
        ku, ki = jax.random.split(key)
        # nn.init.normal_(std=0.1) -- parameters kept in f32
        self.user_embedding = 0.1 * jax.random.normal(
            ku, (num_users, embedding_size), dtype=jnp.float32)
        self.item_embedding = 0.1 * jax.random.normal(
            ki, (num_items, embedding_size), dtype=jnp.float32)

        a_f32 = adjacency_matrix.astype(jnp.float32)   # dense binary interactions
        rowsum = jnp.sum(a_f32, axis=1, keepdims=True)
        # D^-1 row scale kept in full f32 (never rounded to bf16).
        self.inv_deg = jnp.where(rowsum > 0, 1.0 / rowsum, 0.0)      # (U, 1)
        # Full-precision normalized A, only for the f32 reference check.
        self.A = a_f32 * self.inv_deg
        # Binary A is exact in bf16; normalization applied in-kernel.
        self.A_bin_bf16 = a_f32.astype(jnp.bfloat16)
        self.item_emb_bf16 = self.item_embedding.astype(jnp.bfloat16)

    def forward(self, user_indices, item_indices):
        # TODO(synk): n_layers == 0 (no propagation) would need the layer-0
        # user embedding passed to the kernel; not supported here.
        assert self.n_layers >= 1
        return lightgcn_forward(
            user_indices.astype(jnp.int32), item_indices.astype(jnp.int32),
            self.A_bin_bf16, self.inv_deg, self.item_emb_bf16,
            n_layers=self.n_layers)


# ---------------------------------------------------------------------------
# References for correctness checks
# ---------------------------------------------------------------------------
def reference_forward_kernel_math(model, user_indices, item_indices):
    """Same binary-A bf16 / f32 inv-degree math as the kernel, in plain JAX."""
    a = model.A_bin_bf16
    inv_deg = model.inv_deg
    iemb = model.item_emb_bf16.astype(jnp.float32)
    uemb = None
    for _ in range(model.n_layers):
        uemb = inv_deg * jnp.dot(a, iemb.astype(jnp.bfloat16),
                                 preferred_element_type=jnp.float32)
        iemb = jnp.dot(a.T, (inv_deg * uemb).astype(jnp.bfloat16),
                       preferred_element_type=jnp.float32)
    s = jnp.sum(uemb[user_indices] * iemb[item_indices], axis=1)
    return jax.nn.sigmoid(s)


def reference_forward_f32(model, user_indices, item_indices):
    """Full-precision reference (matches the original PyTorch semantics)."""
    u = model.user_embedding
    i = model.item_embedding
    a = model.A
    for _ in range(model.n_layers):
        u = a @ i
        i = a.T @ u
    return jax.nn.sigmoid(jnp.sum(u[user_indices] * i[item_indices], axis=1))


if __name__ == "__main__":
    num_users = 48
    num_items = 64
    embedding_size = 32
    n_layers = 2
    batch = 8

    key = jax.random.PRNGKey(0)
    k_adj, k_emb, k_u, k_i = jax.random.split(key, 4)

    # Deterministic synthetic user-item interaction matrix (binary).
    adj = jax.random.bernoulli(
        k_adj, p=0.15, shape=(num_users, num_items)).astype(jnp.float32)

    model = LightGCNPallas(num_users, num_items, embedding_size, n_layers,
                           adj, k_emb)

    user_indices = jax.random.randint(k_u, (batch,), 0, num_users,
                                      dtype=jnp.int32)
    item_indices = jax.random.randint(k_i, (batch,), 0, num_items,
                                      dtype=jnp.int32)

    scores = model.forward(user_indices, item_indices)
    scores = jax.block_until_ready(scores)

    ref_kernel_math = reference_forward_kernel_math(model, user_indices,
                                                    item_indices)
    ref_f32 = reference_forward_f32(model, user_indices, item_indices)

    assert scores.shape == (batch,)
    assert jnp.allclose(scores, ref_kernel_math, atol=1e-4, rtol=1e-4), (
        scores, ref_kernel_math)
    assert jnp.allclose(scores, ref_f32, atol=2e-3, rtol=2e-3), (scores, ref_f32)

    print("KERNEL_OK")
</pallas_src>

<mosaic_0001>
module attributes {stable_mosaic.version = 11 : i64} {
  func.func @_lightgcn_fused_kernel(%arg0: memref<8x1xi32, #tpu.memory_space<vmem>>, %arg1: memref<8x1xi32, #tpu.memory_space<vmem>>, %arg2: memref<48x64xbf16, #tpu.memory_space<vmem>>, %arg3: memref<48x1xf32, #tpu.memory_space<vmem>>, %arg4: memref<64x32xbf16, #tpu.memory_space<vmem>>, %arg5: memref<8x128xf32, #tpu.memory_space<vmem>>) attributes {dimension_semantics = [], scalar_prefetch = 0 : i64, scratch_operands = 0 : i64, tpu.core_type = #tpu.core_type<tc>} {
    %c0 = arith.constant 0 : index
    %c0_0 = arith.constant 0 : index
    %0 = vector.load %arg2[%c0, %c0_0] : memref<48x64xbf16, #tpu.memory_space<vmem>>, vector<48x64xbf16>
    %c0_1 = arith.constant 0 : index
    %c0_2 = arith.constant 0 : index
    %1 = vector.load %arg3[%c0_1, %c0_2] : memref<48x1xf32, #tpu.memory_space<vmem>>, vector<48x1xf32>
    %c0_3 = arith.constant 0 : index
    %c0_4 = arith.constant 0 : index
    %2 = vector.load %arg4[%c0_3, %c0_4] : memref<64x32xbf16, #tpu.memory_space<vmem>>, vector<64x32xbf16>
    %3 = arith.extf %2 : vector<64x32xbf16> to vector<64x32xf32>
    %4 = arith.truncf %3 : vector<64x32xf32> to vector<64x32xbf16>
    %cst = arith.constant dense<0.000000e+00> : vector<48x32xf32>
    %5 = tpu.matmul %0, %4, %cst {dimension_numbers = #tpu.dot_dimension_numbers<[1], [0], [0], [1], [0, 0, 1, 1], [], []>} : vector<48x64xbf16>, vector<64x32xbf16>, vector<48x32xf32> -> vector<48x32xf32>
    %6 = vector.broadcast %1 : vector<48x1xf32> to vector<48x32xf32>
    %7 = arith.mulf %6, %5 : vector<48x32xf32>
    %8 = vector.broadcast %1 : vector<48x1xf32> to vector<48x32xf32>
    %9 = arith.mulf %8, %7 : vector<48x32xf32>
    %10 = arith.truncf %9 : vector<48x32xf32> to vector<48x32xbf16>
    %cst_5 = arith.constant dense<0.000000e+00> : vector<64x32xf32>
    %11 = tpu.matmul %0, %10, %cst_5 {dimension_numbers = #tpu.dot_dimension_numbers<[0], [0], [1], [1], [0, 1, 1, 1], [], []>} : vector<48x64xbf16>, vector<48x32xbf16>, vector<64x32xf32> -> vector<64x32xf32>
    %12 = arith.truncf %11 : vector<64x32xf32> to vector<64x32xbf16>
    %cst_6 = arith.constant dense<0.000000e+00> : vector<48x32xf32>
    %13 = tpu.matmul %0, %12, %cst_6 {dimension_numbers = #tpu.dot_dimension_numbers<[1], [0], [0], [1], [0, 0, 1, 1], [], []>} : vector<48x64xbf16>, vector<64x32xbf16>, vector<48x32xf32> -> vector<48x32xf32>
    %14 = vector.broadcast %1 : vector<48x1xf32> to vector<48x32xf32>
    %15 = arith.mulf %14, %13 : vector<48x32xf32>
    %16 = vector.broadcast %1 : vector<48x1xf32> to vector<48x32xf32>
    %17 = arith.mulf %16, %15 : vector<48x32xf32>
    %18 = arith.truncf %17 : vector<48x32xf32> to vector<48x32xbf16>
    %cst_7 = arith.constant dense<0.000000e+00> : vector<64x32xf32>
    %19 = tpu.matmul %0, %18, %cst_7 {dimension_numbers = #tpu.dot_dimension_numbers<[0], [0], [1], [1], [0, 1, 1, 1], [], []>} : vector<48x64xbf16>, vector<48x32xbf16>, vector<64x32xf32> -> vector<64x32xf32>
    %c0_8 = arith.constant 0 : index
    %c0_9 = arith.constant 0 : index
    %20 = vector.load %arg0[%c0_8, %c0_9] : memref<8x1xi32, #tpu.memory_space<vmem>>, vector<8x1xi32>
    %c0_10 = arith.constant 0 : index
    %c0_11 = arith.constant 0 : index
    %21 = vector.load %arg1[%c0_10, %c0_11] : memref<8x1xi32, #tpu.memory_space<vmem>>, vector<8x1xi32>
    %22 = tpu.iota {dimensions = array<i32: 1>} : vector<8x48xi32>
    %23 = vector.broadcast %20 : vector<8x1xi32> to vector<8x48xi32>
    %24 = arith.cmpi eq, %22, %23 : vector<8x48xi32>
    %25 = arith.extui %24 : vector<8x48xi1> to vector<8x48xi32>
    %26 = arith.sitofp %25 : vector<8x48xi32> to vector<8x48xf32>
    %27 = tpu.iota {dimensions = array<i32: 1>} : vector<8x64xi32>
    %28 = vector.broadcast %21 : vector<8x1xi32> to vector<8x64xi32>
    %29 = arith.cmpi eq, %27, %28 : vector<8x64xi32>
    %30 = arith.extui %29 : vector<8x64xi1> to vector<8x64xi32>
    %31 = arith.sitofp %30 : vector<8x64xi32> to vector<8x64xf32>
    %cst_12 = arith.constant dense<0.000000e+00> : vector<8x32xf32>
    %32 = tpu.matmul %26, %15, %cst_12 {dimension_numbers = #tpu.dot_dimension_numbers<[1], [0], [0], [1], [0, 0, 1, 1], [], []>} : vector<8x48xf32>, vector<48x32xf32>, vector<8x32xf32> -> vector<8x32xf32>
    %cst_13 = arith.constant dense<0.000000e+00> : vector<8x32xf32>
    %33 = tpu.matmul %31, %19, %cst_13 {dimension_numbers = #tpu.dot_dimension_numbers<[1], [0], [0], [1], [0, 0, 1, 1], [], []>} : vector<8x64xf32>, vector<64x32xf32>, vector<8x32xf32> -> vector<8x32xf32>
    %34 = arith.mulf %32, %33 : vector<8x32xf32>
    %cst_14 = arith.constant dense<0.000000e+00> : vector<8xf32>
    %35 = vector.multi_reduction <add>, %34, %cst_14 [1] : vector<8x32xf32> to vector<8xf32>
    %36 = vector.shape_cast %35 : vector<8xf32> to vector<8x1xf32>
    %37 = arith.negf %36 : vector<8x1xf32>
    %38 = math.exp %37 : vector<8x1xf32>
    %cst_15 = arith.constant 1.000000e+00 : f32
    %39 = vector.broadcast %cst_15 : f32 to vector<8x1xf32>
    %40 = arith.addf %39, %38 : vector<8x1xf32>
    %41 = arith.divf %39, %40 : vector<8x1xf32>
    %42 = vector.shape_cast %41 : vector<8x1xf32> to vector<8x1xf32>
    %43 = vector.broadcast %42 : vector<8x1xf32> to vector<8x128xf32>
    %c0_16 = arith.constant 0 : index
    %c0_17 = arith.constant 0 : index
    %44 = vector.load %arg5[%c0_16, %c0_17] : memref<8x128xf32, #tpu.memory_space<vmem>>, vector<8x128xf32>
    tpu.vector_store %arg5[%c0_16, %c0_17], %43 {strides = array<i32>} : memref<8x128xf32, #tpu.memory_space<vmem>>, vector<8x128xf32>,
    return
  }
}

</mosaic_0001>

<bundles_post_ra>
// kernel: lightgcn_forward.1
= control target key start
LH: loop header
LB: loop body
LE: loop exit
PB: predicated region body
PF: predicated region fallthrough
CT: control target
= control target key end

     0   :  { %v446_v0 = vmov 0   ;;  %vm80_vm0 = vcmask 523264   ;;  %v294_v21 = vlaneseq  ;;  %v447_v24 = vmov 0.0   ;;  %s596_s3 = inlined_call_operand.vmem [shape: f32[48,1], index: 3, kind: input, shape index: {}]   ;;  %s597_s4 = inlined_call_operand.vmem [shape: bf16[64,32], index: 4, kind: input, shape index: {}]   ;;  %s598_s2 = inlined_call_operand.vmem [shape: bf16[48,64], index: 2, kind: input, shape index: {}]   ;;  %s599_s1 = inlined_call_operand.vmem [shape: s32[8,1], index: 1, kind: input, shape index: {}]   ;;  %s600_s0 = inlined_call_operand.vmem [shape: s32[8,1], index: 0, kind: input, shape index: {}]   ;;  %s601_s5 = inlined_call_operand.vmem [shape: f32[8,128], index: 5, kind: output, shape index: {}]  }
   0x1   :  { %439 = vset.pattern.permute.xlu0 %v446_v0  ;;  %v31_v1 = vld [vmem:[%s596_s3 + $0x20] sm:$0xff]  ;;  %v436_v2 = vld [vmem:[%s597_s4 + $0x18] sm:$0xff]  ;;  %440 = vset.pattern.permute.xlu1 %v446_v0  ;;  %v435_v3 = vld [vmem:[%s597_s4 + $0x10] sm:$0xff]  ;;  %vm178_vm2 = vcmask 392192   ;;  %vm355_vm4 = vcmask 261120  }
   0x2   :  { %136 = vperm.xlu0 %439, %v31_v1   ;;  %441 = vset.pattern.permute.xlu2 %v446_v0  ;;  %v32_v4 = vld [vmem:[%s596_s3 + $0x28] sm:$0xff]  ;;  %v433_v6 = vld [vmem:[%s597_s4] sm:$0xff]  ;;  %v29_v8 = vld [vmem:[%s596_s3 + $0x10] sm:$0xff]  ;;  %v542_v22 = vand.u32 127, %v294_v21 }
   0x3   :  { %94 = vmatpush.bf16.msra.mxu0 %v436_v2  ;;  %v434_v5 = vld [vmem:[%s597_s4 + $0x8] sm:$0xff]  ;;  %v499_v7 = vld [vmem:[%s598_s2] sm:$0xff]  ;;  %126 = vperm.xlu1 %440, %v29_v8   ;;  %v30_v9 = vld [vmem:[%s596_s3 + $0x18] sm:$0xff] }
   0x4   :  { %v27_v10 = vld [vmem:[%s596_s3] sm:$0xff]  ;;  %v515_v11 = vld [vmem:[%s598_s2 + $0x8] sm:$0xff]  ;;  %v532_v15 = vld [vmem:[%s598_s2 + $0x10] sm:$0xff] }
   0x5   :  { %116 = vperm.xlu2 %441, %v27_v10   ;;  %v28_v12 = vld [vmem:[%s596_s3 + $0x8] sm:$0xff]  ;;  %v293_v13 = vld [vmem:[%s599_s1] sm:$0xff] }
   0x6   :  { %v292_v14 = vld [vmem:[%s600_s0] sm:$0xff] }
   0x7   :  { %95 = vmatpush.bf16.msra.mxu0 %v435_v3 }
   0xa   :  { %141 = vperm.xlu0 %439, %v32_v4  }
   0xb   :  { %96 = vmatpush.bf16.msra.mxu0 %v434_v5  ;;  %131 = vperm.xlu1 %440, %v30_v9  }
   0xd   :  { %121 = vperm.xlu2 %441, %v28_v12  }
   0xf   :  { %97 = vmatpush.bf16.msra.mxu0 %v433_v6 }
  0x12   :  { %411 = vmatmul.msk.bf16.vlgmr.msra.gmra.mxu0 %vm80_vm0, %v499_v7 }
  0x13   :  { %303 = vperm.xlu1 %440, %v293_v13  }
  0x15   :  { %297 = vperm.xlu2 %441, %v292_v14  }
  0x22   :  { %412 = vmatmul.msk.bf16.gmra.mxu0 %vm80_vm0, %v515_v11 }
  0x2c   :  { %162 = vxpose.xlu0.c.b16.start [1/3] (short) (narrow) %v499_v7, 64 }
  0x32   :  { %413 = vmatmul.msk.bf16.gmra.mxu0 %vm80_vm0, %v532_v15 }
  0x3c   :  { %163 = vxpose.xlu0.c.b16.cont [2/3] (short) (narrow) %v515_v11, 64 }
  0x4c   :  { %164 = vxpose.xlu0.c.b16.end [3/3] (short) (narrow) %v532_v15, 64 }
  0x5f   :  { %v550_v28 = vpop.permute.xlu2 %116 }
  0x67   :  { %v555_v36 = vpop.permute.xlu2 %121 }
  0x74   :  { %v548_v27 = vpop.permute.xlu0 %136 }
  0x75   :  { %v538_v17 = vpop.permute.xlu1 %126 }
  0x7c   :  { %v142_v31 = vpop.permute.xlu0 %141 }
  0x7d   :  { %v540_v19 = vpop.permute.xlu1 %131 }
  0x85   :  { %v304_v23 = vpop.permute.xlu1 %303 }
  0x86   :  { %vm305_vm1 = vcmp.eq.s32.totalorder %v542_v22, %v304_v23 }
  0x87   :  { %v546_v25 = vsel %vm305_vm1, 1.0, %v447_v24 }
  0x8f   :  { %v99_v16 = vpop.f32.mrf.mxu0 }
  0x90   :  { %v144_v39 = vmul.f32 %v550_v28, %v99_v16 }
  0x92   :  { %v150_v45 = vmul.f32 %v144_v39, %v550_v28 }
  0x97   :  { %v101_v18 = vpop.f32.mrf.mxu0 }
  0x98   :  { %v145_v43 = vmul.f32 %v555_v36, %v101_v18 }
  0x9a   :  { %v151_v46 = vmul.f32 %v145_v43, %v555_v36 }
  0x9c   :  { %v156_v47 = vpack.c.bf16 %v151_v46, %v150_v45 }
  0x9f   :  { %v104_v20 = vpop.f32.mrf.mxu0 }
  0xa0   :  { %v146_v34 = vmul.f32 %v538_v17, %v104_v20 }
  0xa2   :  { %v152_v41 = vmul.f32 %v146_v34, %v538_v17 }
  0xa7   :  { %v106_v26 = vpop.f32.mrf.mxu0 }
  0xa8   :  { %v147_v35 = vmul.f32 %v540_v19, %v106_v26 }
  0xaa   :  { %v153_v42 = vmul.f32 %v147_v35, %v540_v19 }
  0xac   :  { %v157_v44 = vpack.c.bf16 %v153_v42, %v152_v41 }
  0xaf   :  { %v109_v29 = vpop.f32.mrf.mxu0 }
  0xb0   :  { %v148_v30 = vmul.f32 %v548_v27, %v109_v29 }
  0xb2   :  { %v154_v37 = vmul.f32 %v148_v30, %v548_v27 }
  0xb7   :  { %v111_v32 = vpop.f32.mrf.mxu0 }
  0xb8   :  { %v149_v33 = vmul.f32 %v142_v31, %v111_v32 }
  0xba   :  { %v155_v38 = vmul.f32 %v149_v33, %v142_v31 }
  0xbc   :  { %v158_v40 = vpack.c.bf16 %v155_v38, %v154_v37 }
  0xbe   :  { %196 = vmatpush.bf16.msra.mxu1 %v158_v40 }
  0xc2   :  { %197 = vmatpush.bf16.msra.mxu1 %v157_v44 }
  0xc6   :  { %198 = vmatpush.bf16.msra.mxu1 %v156_v47 }
  0xd8   :  { %v170_v48 = vpop.trf.xlu0 }
  0xd9   :  { %414 = vmatmul.msk.bf16.vlgmr.msra.gmra.mxu1 %vm178_vm2, %v170_v48 }
  0xe8   :  { %v171_v49 = vpop.trf.xlu0 }
  0xe9   :  { %415 = vmatmul.msk.bf16.gmra.mxu1 %vm178_vm2, %v171_v49 }
  0xf8   :  { %v172_v50 = vpop.trf.xlu0 }
  0xf9   :  { %416 = vmatmul.msk.bf16.gmra.mxu1 %vm178_vm2, %v172_v50 }
 0x108   :  { %v173_v51 = vpop.trf.xlu0 }
 0x109   :  { %417 = vmatmul.msk.bf16.gmra.mxu1 %vm178_vm2, %v173_v51 }
 0x156   :  { %v200_v52 = vpop.f32.mrf.mxu1 }
 0x15e   :  { %v202_v53 = vpop.f32.mrf.mxu1 }
 0x15f   :  { %v220_v63 = vpack.c.bf16 %v202_v53, %v200_v52 }
 0x166   :  { %v205_v54 = vpop.f32.mrf.mxu1 }
 0x16e   :  { %v207_v55 = vpop.f32.mrf.mxu1 }
 0x16f   :  { %v221_v62 = vpack.c.bf16 %v207_v55, %v205_v54 }
 0x176   :  { %v210_v56 = vpop.f32.mrf.mxu1 }
 0x17e   :  { %v212_v57 = vpop.f32.mrf.mxu1 }
 0x17f   :  { %v222_v61 = vpack.c.bf16 %v212_v57, %v210_v56 }
 0x186   :  { %v215_v58 = vpop.f32.mrf.mxu1 }
 0x18e   :  { %v217_v59 = vpop.f32.mrf.mxu1 }
 0x18f   :  { %v223_v60 = vpack.c.bf16 %v217_v59, %v215_v58 }
 0x191   :  { %228 = vmatpush.bf16.msra.mxu2 %v223_v60 }
 0x195   :  { %229 = vmatpush.bf16.msra.mxu2 %v222_v61 }
 0x199   :  { %230 = vmatpush.bf16.msra.mxu2 %v221_v62 }
 0x19d   :  { %231 = vmatpush.bf16.msra.mxu2 %v220_v63 }
 0x1a0   :  { %418 = vmatmul.msk.bf16.vlgmr.msra.gmra.mxu2 %vm80_vm0, %v499_v7 }
 0x1b0   :  { %419 = vmatmul.msk.bf16.gmra.mxu2 %vm80_vm0, %v515_v11 }
 0x1c0   :  { %420 = vmatmul.msk.bf16.gmra.mxu2 %vm80_vm0, %v532_v15  ;;  %v298_v15 = vpop.permute.xlu2 %297 }
 0x1c1   :  { %vm299_vm3 = vcmp.eq.s32.totalorder %v542_v22, %v298_v15 }
 0x223   :  { %v233_v0 = vpop.f32.mrf.mxu2 }
 0x224   :  { %v248_v16 = vmul.f32 %v233_v0, %v550_v28 }
 0x226   :  { %v254_v23 = vmul.f32 %v248_v16, %v550_v28 }
 0x22b   :  { %v235_v1 = vpop.f32.mrf.mxu2 }
 0x22c   :  { %v249_v12 = vmul.f32 %v235_v1, %v555_v36 }
 0x22e   :  { %v255_v20 = vmul.f32 %v249_v12, %v555_v36 }
 0x230   :  { %v260_v26 = vpack.c.bf16 %v255_v20, %v254_v23 }
 0x233   :  { %v238_v2 = vpop.f32.mrf.mxu2 }
 0x234   :  { %v250_v10 = vmul.f32 %v238_v2, %v538_v17 }
 0x236   :  { %v256_v18 = vmul.f32 %v250_v10, %v538_v17 }
 0x23b   :  { %v240_v3 = vpop.f32.mrf.mxu2 }
 0x23c   :  { %v251_v8 = vmul.f32 %v240_v3, %v540_v19 }
 0x23e   :  { %v257_v13 = vmul.f32 %v251_v8, %v540_v19  ;;  %v425_v19 = vsel %vm299_vm3, 1.0, %v447_v24 }
 0x240   :  { %v261_v21 = vpack.c.bf16 %v257_v13, %v256_v18 }
 0x243   :  { %v243_v4 = vpop.f32.mrf.mxu2 }
 0x244   :  { %v252_v5 = vmul.f32 %v243_v4, %v548_v27 }
 0x246   :  { %v258_v7 = vmul.f32 %v252_v5, %v548_v27 }
 0x24b   :  { %v245_v6 = vpop.f32.mrf.mxu2 }
 0x24c   :  { %v253_v9 = vmul.f32 %v245_v6, %v142_v31 }
 0x24e   :  { %321 = vmatpush.msrb.mxu0 %v253_v9  ;;  %v259_v11 = vmul.f32 %v253_v9, %v142_v31 }
 0x250   :  { %322 = vmatpush.msrb.mxu0 %v252_v5  ;;  %v262_v14 = vpack.c.bf16 %v259_v11, %v258_v7 }
 0x252   :  { %268 = vmatpush.bf16.msra.mxu3 %v262_v14  ;;  %323 = vmatpush.msrb.mxu0 %v251_v8 }
 0x254   :  { %324 = vmatpush.msrb.mxu0 %v250_v10 }
 0x256   :  { %269 = vmatpush.bf16.msra.mxu3 %v261_v21  ;;  %325 = vmatpush.msrb.mxu0 %v249_v12 }
 0x258   :  { %326 = vmatpush.msrb.mxu0 %v248_v16 }
 0x259   :  { %427 = vmatmul.msk.f32.vlgmr.msrb.gmra.mxu0 %vm178_vm2, %v425_v19 }
 0x25a   :  { %270 = vmatpush.bf16.msra.mxu3 %v260_v26 }
 0x25d   :  { %421 = vmatmul.msk.bf16.vlgmr.msra.gmra.mxu3 %vm178_vm2, %v170_v48 }
 0x26d   :  { %422 = vmatmul.msk.bf16.gmra.mxu3 %vm178_vm2, %v171_v49 }
 0x27d   :  { %423 = vmatmul.msk.bf16.gmra.mxu3 %vm178_vm2, %v172_v50 }
 0x28d   :  { %424 = vmatmul.msk.bf16.gmra.mxu3 %vm178_vm2, %v173_v51 }
 0x2d6   :  { %v328_v32 = vpop.f32.mrf.mxu0 }
 0x2e0   :  { %v272_v17 = vpop.f32.mrf.mxu3 }
 0x2e8   :  { %v274_v22 = vpop.f32.mrf.mxu3 }
 0x2f0   :  { %v277_v27 = vpop.f32.mrf.mxu3 }
 0x2f8   :  { %v279_v28 = vpop.f32.mrf.mxu3 }
 0x300   :  { %v282_v29 = vpop.f32.mrf.mxu3 }
 0x308   :  { %v284_v30 = vpop.f32.mrf.mxu3 }
 0x310   :  { %v287_v24 = vpop.f32.mrf.mxu3 }
 0x318   :  { %v289_v31 = vpop.f32.mrf.mxu3 }
 0x319   :  { %342 = vmatpush.msrb.mxu2 %v289_v31 }
 0x31b   :  { %343 = vmatpush.msrb.mxu2 %v287_v24 }
 0x31d   :  { %344 = vmatpush.msrb.mxu2 %v284_v30 }
 0x31f   :  { %345 = vmatpush.msrb.mxu2 %v282_v29 }
 0x321   :  { %346 = vmatpush.msrb.mxu2 %v279_v28 }
 0x323   :  { %347 = vmatpush.msrb.mxu2 %v277_v27 }
 0x325   :  { %348 = vmatpush.msrb.mxu2 %v274_v22 }
 0x327   :  { %349 = vmatpush.msrb.mxu2 %v272_v17 }
 0x328   :  { %428 = vmatmul.msk.f32.vlgmr.msrb.gmra.mxu2 %vm80_vm0, %v546_v25 }
 0x3ab   :  { %v351_v33 = vpop.f32.mrf.mxu2 }
 0x3ac   :  { %v354_v34 = vmul.f32 %v351_v33, %v328_v32 }
 0x3ae   :  { %v356_v35 = vsel %vm355_vm4, %v354_v34, 0.0 }
 0x3af   :  { %357 = vadd.xlane.f32.xlu1 %v356_v35 }
 0x422   :  { %v358_v36 = vpop.xlane.xlu1 %357 }
 0x423   :  { %v429_v37 = vmul.f32 -1.442695, %v358_v36 }
 0x425   :  { %442 = vpow2.f32 %v429_v37 }
 0x42b   :  { %v443_v38 = vpop.eup %442 }
 0x42c   :  { %v362_v39 = vadd.f32 1.0, %v443_v38 }
 0x42e   :  { %444 = vrcp.f32 %v362_v39  ;;  %v374_v43 = vand.u32 2147483648, %v362_v39  ;;  %v372_v45 = vand.u32 2147483647, %v362_v39  ;;  %vm368_vm6 = vweird.f32 %v362_v39 }
 0x430   :  { %v375_v46 = vor.u32 1.1754944e-38, %v374_v43  ;;  %vm373_vm8 = vcmp.eq.f32.partialorder %v372_v45, 8.507059e+37 }
 0x434   :  { %v445_v40 = vpop.eup %444 }
 0x435   :  { %v364_v41 = vmul.f32 %v445_v40, %v362_v39  ;;  %vm369_vm5 = vweird.f32 %v445_v40 }
 0x436   :  { %vm370_vm7 = vmor %vm368_vm6, %vm369_vm5 }
 0x437   :  { %v365_v42 = vsub.f32 1.0, %v364_v41 }
 0x439   :  { %v366_v44 = vmul.f32 %v445_v40, %v365_v42 }
 0x43b   :  { %v367_v25 = vadd.f32 %v445_v40, %v366_v44 }
 0x43d   :  { %v371_v47 = vsel %vm370_vm7, %v445_v40, %v367_v25 }
 0x43e   :  { %v376_v48 = vsel %vm373_vm8, %v375_v46, %v371_v47 }
 0x43f   :  { %378 = vst [vmem:[%s601_s5] sm:$0xff] %v376_v48 }

</bundles_post_ra>
